<compile_context>
chip_gen: v7x
topology: tpu7x:2x2x1
jax: 0.10.0
libtpu: 0.0.40
codegen_flags: <defaults>
</compile_context>

<pallas_src>
import itertools

import numpy as np
import jax
import jax.numpy as jnp
from jax.experimental import pallas as pl
from jax.experimental.pallas import tpu as pltpu


def _round_up(x, m):
    return -(-x // m) * m


def _patch_embed_kernel(p_ref, w_ref, b_ref, o_ref):
    """Fused projection: tokens = patches^T @ W + b (single MXU matmul).

    p_ref: (1, K, TP)  im2col patches for one batch item / token tile
    w_ref: (K, Dp)     conv weight reshaped to (K, D) (D padded to x128)
    b_ref: (1, Dp)     bias
    o_ref: (1, TP, Dp) output tokens, already in [tokens, D] layout
    """
    acc = jax.lax.dot_general(
        p_ref[0], w_ref[...],
        dimension_numbers=(((0,), (0,)), ((), ())),   # contract over K
        preferred_element_type=jnp.float32,
    )                                                  # (TP, Dp)
    o_ref[0] = (acc + b_ref[...]).astype(o_ref.dtype)


def _im2col(x, kernel, stride, padding):
    """Strided patch gather at trace time (XLA): (N, C, *S) -> (N, K, P).

    K = C * prod(kernel), ordered (c, *kernel_offsets) to match the PyTorch
    conv weight layout (D, C, *kernel) reshaped to (D, K).
    """
    # TODO(synk): do this strided gather in-kernel (manual DMA / strided refs)
    # so PatchEmbed becomes a single fully-fused Pallas pass.
    N, C = x.shape[:2]
    spatial = x.shape[2:]
    nd = len(spatial)
    out_sp = tuple(
        (spatial[i] + 2 * padding[i] - kernel[i]) // stride[i] + 1
        for i in range(nd)
    )
    xp = jnp.pad(x, ((0, 0), (0, 0)) + tuple((p, p) for p in padding))
    taps = []
    for offs in itertools.product(*[range(k) for k in kernel]):
        start = (0, 0) + offs
        limit = (N, C) + tuple(
            offs[i] + (out_sp[i] - 1) * stride[i] + 1 for i in range(nd)
        )
        strides = (1, 1) + tuple(stride)
        taps.append(jax.lax.slice(xp, start, limit, strides))  # (N, C, *out_sp)
    patches = jnp.stack(taps, axis=2)             # (N, C, prod(kernel), *out_sp)
    K = C * len(taps)
    P = int(np.prod(out_sp))
    return patches.reshape(N, K, P), out_sp       # contiguous reshape only


def patch_embed_pallas(x, weight, bias, stride, padding):
    """Forward of PatchEmbed: returns (tokens [N, P, D], conv_output_shape)."""
    N, C = x.shape[:2]
    D = weight.shape[0]
    kernel = weight.shape[2:]

    patches, out_sp = _im2col(x, kernel, stride, padding)   # (N, K, P)
    K, P = patches.shape[1], patches.shape[2]

    # Token tiling: sublane-friendly token tile, many grid steps at real sizes.
    if P >= 128:
        TP = 128
        P_pad = _round_up(P, TP)
    else:
        P_pad = _round_up(P, 8)
        TP = P_pad
    if P_pad != P:
        patches = jnp.pad(patches, ((0, 0), (0, 0), (0, P_pad - P)))

    # Lane-dense output: pad D to a multiple of 128 (only triggers for toy D).
    Dp = _round_up(D, 128)
    w2 = weight.reshape(D, K).T                              # (K, D)
    b2 = bias
    if Dp != D:
        w2 = jnp.pad(w2, ((0, 0), (0, Dp - D)))
        b2 = jnp.pad(b2, (0, Dp - D))
    b2 = b2.reshape(1, Dp)

    grid = (N, P_pad // TP)
    tokens = pl.pallas_call(
        _patch_embed_kernel,
        out_shape=jax.ShapeDtypeStruct((N, P_pad, Dp), x.dtype),
        grid=grid,
        in_specs=[
            pl.BlockSpec((1, K, TP), lambda n, p: (n, 0, p)),
            pl.BlockSpec((K, Dp), lambda n, p: (0, 0)),
            pl.BlockSpec((1, Dp), lambda n, p: (0, 0)),
        ],
        out_specs=pl.BlockSpec((1, TP, Dp), lambda n, p: (n, p, 0)),
        compiler_params=pltpu.CompilerParams(
            dimension_semantics=("parallel", "parallel")),
    )(patches, w2, b2)

    tokens = tokens[:, :P, :D]
    conv_shape = (N, D) + tuple(out_sp)
    return tokens, conv_shape


class PatchEmbed:
    """Pallas mirror of mvit.PatchEmbed (Conv{2,3}d proj + flatten + transpose)."""

    def __init__(self, dim_in=3, dim_out=768, kernel=(7, 7), stride=(4, 4),
                 padding=(3, 3), conv2d=False, *, key):
        nd = 2 if conv2d else 3
        assert len(kernel) == len(stride) == len(padding) == nd
        kw, kb = jax.random.split(key)
        fan_in = dim_in * int(np.prod(kernel))
        bound = 1.0 / float(np.sqrt(fan_in))
        self.weight = jax.random.uniform(
            kw, (dim_out, dim_in) + tuple(kernel), jnp.float32, -bound, bound)
        self.bias = jax.random.uniform(kb, (dim_out,), jnp.float32, -bound, bound)
        self.stride = tuple(stride)
        self.padding = tuple(padding)

    def __call__(self, x):
        return patch_embed_pallas(x, self.weight, self.bias,
                                  self.stride, self.padding)


def _reference(x, weight, bias, stride, padding):
    """Pure-JAX reference of the PyTorch forward."""
    nd = x.ndim - 2
    dn = ('NCHW', 'OIHW', 'NCHW') if nd == 2 else ('NCDHW', 'OIDHW', 'NCDHW')
    y = jax.lax.conv_general_dilated(
        x, weight, window_strides=stride,
        padding=[(p, p) for p in padding], dimension_numbers=dn)
    y = y + bias.reshape((1, -1) + (1,) * nd)
    N, D = y.shape[:2]
    tokens = y.reshape(N, D, -1).transpose(0, 2, 1)
    return tokens, y.shape


if __name__ == "__main__":
    key = jax.random.PRNGKey(0)
    k1, k2, k3, k4 = jax.random.split(key, 4)

    # 2D case (conv2d=True): x [N=2, C=4, H=16, W=16], D=32, 7x7/s4/p3.
    x2 = jax.random.normal(k1, (2, 4, 16, 16), jnp.float32)
    pe2 = PatchEmbed(dim_in=4, dim_out=32, kernel=(7, 7), stride=(4, 4),
                     padding=(3, 3), conv2d=True, key=k2)
    tok2, shp2 = pe2(x2)
    tok2 = jax.block_until_ready(tok2)
    ref_tok2, ref_shp2 = _reference(x2, pe2.weight, pe2.bias, pe2.stride, pe2.padding)
    assert tok2.shape == (2, 16, 32), tok2.shape
    assert tuple(shp2) == tuple(ref_shp2), (shp2, ref_shp2)
    assert jnp.allclose(tok2, ref_tok2, atol=1e-4, rtol=1e-4), \
        float(jnp.max(jnp.abs(tok2 - ref_tok2)))

    # 3D case (conv2d=False, the module's default Conv3d path).
    x3 = jax.random.normal(k3, (1, 3, 4, 8, 8), jnp.float32)
    pe3 = PatchEmbed(dim_in=3, dim_out=16, kernel=(3, 3, 3), stride=(2, 2, 2),
                     padding=(1, 1, 1), conv2d=False, key=k4)
    tok3, shp3 = pe3(x3)
    tok3 = jax.block_until_ready(tok3)
    ref_tok3, ref_shp3 = _reference(x3, pe3.weight, pe3.bias, pe3.stride, pe3.padding)
    assert tok3.shape == (1, 2 * 4 * 4, 16), tok3.shape
    assert tuple(shp3) == tuple(ref_shp3), (shp3, ref_shp3)
    assert jnp.allclose(tok3, ref_tok3, atol=1e-4, rtol=1e-4), \
        float(jnp.max(jnp.abs(tok3 - ref_tok3)))

    print("KERNEL_OK")
</pallas_src>

<mosaic_0001>
module attributes {stable_mosaic.version = 11 : i64} {
  func.func @_patch_embed_kernel(%arg0: i32, %arg1: i32, %arg2: memref<1x196x16xf32, #tpu.memory_space<vmem>>, %arg3: memref<196x128xf32, #tpu.memory_space<vmem>>, %arg4: memref<1x128xf32, #tpu.memory_space<vmem>>, %arg5: memref<1x16x128xf32, #tpu.memory_space<vmem>>) attributes {dimension_semantics = [#tpu.dimension_semantics<parallel>, #tpu.dimension_semantics<parallel>], iteration_bounds = array<i64: 2, 1>, scalar_prefetch = 0 : i64, scratch_operands = 0 : i64, tpu.core_type = #tpu.core_type<tc>, window_params = [{transform_indices = @transform_0, window_bounds = array<i64: 1, 196, 16>}, {pipeline_mode = #tpu.pipeline_mode<synchronous>, transform_indices = @transform_1, window_bounds = array<i64: 196, 128>}, {pipeline_mode = #tpu.pipeline_mode<synchronous>, transform_indices = @transform_2, window_bounds = array<i64: 1, 128>}, {transform_indices = @transform_3, window_bounds = array<i64: 1, 16, 128>}]} {
    %c0 = arith.constant 0 : index
    %c0_0 = arith.constant 0 : index
    %c0_1 = arith.constant 0 : index
    %0 = vector.load %arg2[%c0, %c0_0, %c0_1] : memref<1x196x16xf32, #tpu.memory_space<vmem>>, vector<1x196x16xf32>
    %1 = vector.shape_cast %0 : vector<1x196x16xf32> to vector<196x16xf32>
    %c0_2 = arith.constant 0 : index
    %c0_3 = arith.constant 0 : index
    %2 = vector.load %arg3[%c0_2, %c0_3] : memref<196x128xf32, #tpu.memory_space<vmem>>, vector<196x128xf32>
    %cst = arith.constant dense<0.000000e+00> : vector<16x128xf32>
    %3 = tpu.matmul %1, %2, %cst {dimension_numbers = #tpu.dot_dimension_numbers<[0], [0], [1], [1], [0, 1, 1, 1], [], []>} : vector<196x16xf32>, vector<196x128xf32>, vector<16x128xf32> -> vector<16x128xf32>
    %c0_4 = arith.constant 0 : index
    %c0_5 = arith.constant 0 : index
    %4 = vector.load %arg4[%c0_4, %c0_5] : memref<1x128xf32, #tpu.memory_space<vmem>>, vector<1x128xf32>
    %5 = vector.broadcast %4 : vector<1x128xf32> to vector<16x128xf32>
    %6 = arith.addf %3, %5 : vector<16x128xf32>
    %c0_6 = arith.constant 0 : index
    %c0_7 = arith.constant 0 : index
    %c0_8 = arith.constant 0 : index
    %7 = vector.load %arg5[%c0_6, %c0_7, %c0_8] : memref<1x16x128xf32, #tpu.memory_space<vmem>>, vector<1x16x128xf32>
    %8 = vector.shape_cast %7 : vector<1x16x128xf32> to vector<16x128xf32>
    %9 = vector.shape_cast %6 : vector<16x128xf32> to vector<1x16x128xf32>
    tpu.vector_store %arg5[%c0_6, %c0_7, %c0_8], %9 {strides = array<i32>} : memref<1x16x128xf32, #tpu.memory_space<vmem>>, vector<1x16x128xf32>,
    return
  }
  func.func @transform_0(%arg0: i32, %arg1: i32) -> (i32, i32, i32) {
    %c0_i32 = arith.constant 0 : i32
    %c0_i32_0 = arith.constant 0 : i32
    return %arg0, %c0_i32, %arg1 : i32, i32, i32
  }
  func.func @transform_1(%arg0: i32, %arg1: i32) -> (i32, i32) {
    %c0_i32 = arith.constant 0 : i32
    %c0_i32_0 = arith.constant 0 : i32
    %c0_i32_1 = arith.constant 0 : i32
    return %c0_i32, %c0_i32_0 : i32, i32
  }
  func.func @transform_2(%arg0: i32, %arg1: i32) -> (i32, i32) {
    %c0_i32 = arith.constant 0 : i32
    %c0_i32_0 = arith.constant 0 : i32
    %c0_i32_1 = arith.constant 0 : i32
    return %c0_i32, %c0_i32_0 : i32, i32
  }
  func.func @transform_3(%arg0: i32, %arg1: i32) -> (i32, i32, i32) {
    %c0_i32 = arith.constant 0 : i32
    %c0_i32_0 = arith.constant 0 : i32
    return %arg0, %arg1, %c0_i32 : i32, i32, i32
  }
}

</mosaic_0001>

<bundles_post_ra>
// kernel: tpu_custom_call.1
= control target key start
LH: loop header
LB: loop body
LE: loop exit
PB: predicated region body
PF: predicated region fallthrough
CT: control target
= control target key end

     0   :  { %8 = vsyncpa [#allocation3], 0  ;;  %s987_s0 = inlined_call_operand.vmem [shape: f32[2,196,16], index: 0, kind: input, shape index: {}]   ;;  %s988_s1 = inlined_call_operand.vmem [shape: f32[196,128], index: 1, kind: input, shape index: {}]   ;;  %s989_s2 = inlined_call_operand.vmem [shape: f32[1,128], index: 2, kind: input, shape index: {}]   ;;  %s990_s3 = inlined_call_operand.hbm [shape: f32[2,16,128], index: 3, kind: output, shape index: {}]  }
   0x1   :  { %10 = vsyncpa [#allocation3 + $0x1], 0  ;;  %s743_s12 = smov 0   ;;  %s745_s13 = smov 0  }
   0x2   :  { %s747_s14 = smov 0   ;;  %s749_s15 = smov 0  }
   0x3   :  { %s751_s16 = smov 0   ;;  %s753_s17 = smov 0  }
   0x4 LB: > { %s499_s18 = sadd.s32 4294967295, %s716_s17   ;;  %s500_s19 = sadd.s32 4294967294, %s716_s17   ;;  %s716_s17 = sphi %s753_s17, %s16_s17   ;;  %s712_s16 = sphi %s751_s16, %s997_s16   ;;  %s708_s15 = sphi %s749_s15, %s996_s15   ;;  %s704_s14 = sphi %s747_s14, %s995_s14   ;;  %s700_s13 = sphi %s745_s13, %s994_s13   ;;  %s696_s12 = sphi %s743_s12, %s993_s12  }
   0x5   : > { %s28_s20 = sadd.s32 1, %s712_s16  ;;  %s107_s21 = sadd.s32 1, %s704_s14 }
   0x6   : > { %p30_p0 = scmp.ge.s32.totalorder %s28_s20, 2  ;;  %p117_p1 = scmp.ne.s32.totalorder %s704_s14, %s700_s13 }
   0x7   : > { %p118_p2 = scmp.eq.s32.totalorder %s499_s18, 1  ;;  %p123_p3 = scmp.ne.s32.totalorder %s700_s13, %s696_s12 }
   0x8   : > { %s999_s20 = smov (%p30_p0, %s28_s20), 0  ;;  %p124_p5 = scmp.eq.s32.totalorder %s500_s19, 1 }
   0x9   : > { %p783_p4 = por %p118_p2, %p117_p1  ;;  %s102_s23 = ssub.s32 %s712_s16, %s999_s20 }
   0xa   : > { %p503_p6 = scmp.ge.s32.totalorder %s716_s17, 1  ;;  %p105_p7 = scmp.eq.s32.totalorder %s102_s23, 0 }
   0xb   : > { %p790_p8 = por %p124_p5, %p123_p3  ;;  %p159_p9 = scmp.lt.s32.totalorder %s716_s17, 3 }
   0xc   : > { %s796_s25 = scalar_select %p105_p7, %s704_s14, %s107_s21  }
   0xd   : > { %p160_p10 = pnand %p503_p6, %p159_p9 }
   0xe   : > { %p186_p11 = scmp.lt.s32.totalorder (!%p160_p10), %s708_s15, 1  ;;  %v220_v0 = vld [vmem:[%s988_s1] sm:$0xff] (!%p160_p10)  ;;  %v221_v1 = vld [vmem:[%s988_s1 + $0x8] sm:$0xff] (!%p160_p10)  ;;  %v222_v2 = vld [vmem:[%s988_s1 + $0x10] sm:$0xff] (!%p160_p10)  ;;  %v718_v3 = vmov (!%p160_p10), 0.0|0.0   ;;  %v719_v57 = vmov (!%p160_p10), 0.0  }
   0xf   : > { %163 = sbr.rel (%p160_p10) target bundleno = 391 (0x187), region = 32  ;;  %516 = vmatprep.subr.bf16.mxu0 (!%p160_p10), %v718_v3  ;;  %v517_v4 = vpack.c.bf16 (!%p160_p10), %v221_v1, %v220_v0  ;;  %552 = vmatprep.subr.bf16.mxu1 (!%p160_p10), %v718_v3  ;;  %v223_v5 = vld [vmem:[%s988_s1 + $0x18] sm:$0xff] (!%p160_p10)  ;;  %v224_v7 = vld [vmem:[%s988_s1 + $0x20] sm:$0xff] (!%p160_p10)  ;;  %v225_v8 = vld [vmem:[%s988_s1 + $0x28] sm:$0xff] (!%p160_p10)  ;;  %vm323_vm0 = vcmask (!%p160_p10), 1043456   ;;  %vm316_vm1 = vcmask (!%p160_p10), 556032  }
  0x10   : > { %v520_v6 = vpack.c.bf16 (!%p160_p10), %v223_v5, %v222_v2  ;;  %v523_v11 = vpack.c.bf16 (!%p160_p10), %v225_v8, %v224_v7  ;;  %v226_v12 = vld [vmem:[%s988_s1 + $0x30] sm:$0xff] (!%p160_p10)  ;;  %v227_v13 = vld [vmem:[%s988_s1 + $0x38] sm:$0xff] (!%p160_p10)  ;;  %v228_v17 = vld [vmem:[%s988_s1 + $0x40] sm:$0xff] (!%p160_p10)  ;;  %s183_s5 = sand.u32 (!%p160_p10), 1, %s700_s13   ;;  %s515_s10 = sshll.u32 (!%p160_p10), %s708_s15, 8 }
  0x11   : > { %518 = vmatpush1.bf16.msra.mxu0 (!%p160_p10), %v517_v4  ;;  %565 = vmatpush1.bf16.msra.mxu1 (!%p160_p10), %v517_v4  ;;  %v526_v16 = vpack.c.bf16 (!%p160_p10), %v227_v13, %v226_v12  ;;  %v229_v18 = vld [vmem:[%s988_s1 + $0x48] sm:$0xff] (!%p160_p10)  ;;  %v230_v22 = vld [vmem:[%s988_s1 + $0x50] sm:$0xff] (!%p160_p10)  ;;  %v231_v23 = vld [vmem:[%s988_s1 + $0x58] sm:$0xff] (!%p160_p10)  ;;  %s504_s6 = sshll.u32 (!%p160_p10), %s183_s5, 4  ;;  %s939_s19 = scalar_lea.hbm (!%p160_p10), %s990_s3, %s515_s10 }
  0x12   : > { %519 = vmatprep.subr.bf16.mxu0 (!%p160_p10), %v718_v3  ;;  %553 = vmatprep.subr.bf16.mxu1 (!%p160_p10), %v718_v3  ;;  %v529_v21 = vpack.c.bf16 (!%p160_p10), %v229_v18, %v228_v17  ;;  %v532_v26 = vpack.c.bf16 (!%p160_p10), %v231_v23, %v230_v22  ;;  %v232_v27 = vld [vmem:[%s988_s1 + $0x60] sm:$0xff] (!%p160_p10)  ;;  %v233_v28 = vld [vmem:[%s988_s1 + $0x68] sm:$0xff] (!%p160_p10)  ;;  %v234_v32 = vld [vmem:[%s988_s1 + $0x70] sm:$0xff] (!%p160_p10)  ;;  %s941_s21 = scalar_lea.sflag (!%p160_p10), [#allocation3], %s183_s5 }
  0x13   : > { %v535_v31 = vpack.c.bf16 (!%p160_p10), %v233_v28, %v232_v27  ;;  %v235_v33 = vld [vmem:[%s988_s1 + $0x78] sm:$0xff] (!%p160_p10)  ;;  %v236_v37 = vld [vmem:[%s988_s1 + $0x80] sm:$0xff] (!%p160_p10)  ;;  %v237_v38 = vld [vmem:[%s988_s1 + $0x88] sm:$0xff] (!%p160_p10) }
  0x14   : > { %v538_v36 = vpack.c.bf16 (!%p160_p10), %v235_v33, %v234_v32  ;;  %v541_v41 = vpack.c.bf16 (!%p160_p10), %v237_v38, %v236_v37  ;;  %v238_v42 = vld [vmem:[%s988_s1 + $0x90] sm:$0xff] (!%p160_p10)  ;;  %v239_v43 = vld [vmem:[%s988_s1 + $0x98] sm:$0xff] (!%p160_p10)  ;;  %v240_v47 = vld [vmem:[%s988_s1 + $0xa0] sm:$0xff] (!%p160_p10) }
  0x15   : > { %521 = vmatpush1.bf16.msra.mxu0 (!%p160_p10), %v520_v6  ;;  %566 = vmatpush1.bf16.msra.mxu1 (!%p160_p10), %v520_v6  ;;  %v544_v46 = vpack.c.bf16 (!%p160_p10), %v239_v43, %v238_v42  ;;  %v241_v48 = vld [vmem:[%s988_s1 + $0xa8] sm:$0xff] (!%p160_p10)  ;;  %v242_v52 = vld [vmem:[%s988_s1 + $0xb0] sm:$0xff] (!%p160_p10)  ;;  %v243_v53 = vld [vmem:[%s988_s1 + $0xb8] sm:$0xff] (!%p160_p10) }
  0x16   : > { %s187_s7 = scalar_select %p186_p11, %s708_s15, 1  ;;  %522 = vmatprep.subr.bf16.mxu0 %v718_v3  ;;  %554 = vmatprep.subr.bf16.mxu1 %v718_v3  ;;  %v547_v51 = vpack.c.bf16 %v241_v48, %v240_v47  ;;  %v550_v55 = vpack.c.bf16 %v243_v53, %v242_v52  ;;  %v244_v58 = vld [vmem:[%s988_s1 + $0xc0] sm:$0xf] }
  0x17   : > { %v506_v4 = vld [vmem:[%s989_s2] ss:$0 sm:$0xff]  ;;  %s720_s15 = smov [#allocation2]  }
  0x18   : > { %s578_s8 = smul.u32 200, %s187_s7  ;;  %s642_s27 = sshll.u32 %s720_s15, 4  ;;  %s643_s27 = int_to_ptr.vmem [resolvable:$false] %s642_s27 }
  0x19   : > { %524 = vmatpush1.bf16.msra.mxu0 %v523_v11  ;;  %567 = vmatpush1.bf16.msra.mxu1 %v523_v11  ;;  %s644_s28 = scalar_lea.vmem %s643_s27, 512 }
  0x1a   : > { %s825_s23 = scalar_lea.vmem %s987_s0, %s578_s8  ;;  %525 = vmatprep.subr.bf16.mxu0 %v718_v3  ;;  %555 = vmatprep.subr.bf16.mxu1 %v718_v3 }
  0x1b   : > { %v211_v9 = vld [vmem:[%s825_s23 + $0x80] sm:$0xff]  ;;  %v212_v14 = vld [vmem:[%s825_s23 + $0x88] sm:$0xff]  ;;  %v213_v19 = vld [vmem:[%s825_s23 + $0x90] sm:$0xff] }
  0x1c   : > { %v195_v10 = vld [vmem:[%s825_s23] sm:$0xff]  ;;  %284 = vxpose.xlu0.b32.start [1/9] (short) (narrow) %v211_v9, 16  ;;  %v196_v15 = vld [vmem:[%s825_s23 + $0x8] sm:$0xff]  ;;  %v197_v20 = vld [vmem:[%s825_s23 + $0x10] sm:$0xff] }
  0x1d   : > { %252 = vxpose.xlu1.b32.start [1/16] (narrow) %v195_v10, 16  ;;  %527 = vmatpush1.bf16.msra.mxu0 %v526_v16  ;;  %v214_v24 = vld [vmem:[%s825_s23 + $0x98] sm:$0xff]  ;;  %v215_v29 = vld [vmem:[%s825_s23 + $0xa0] sm:$0xff]  ;;  %v216_v34 = vld [vmem:[%s825_s23 + $0xa8] sm:$0xff] }
  0x1e   : > { %568 = vmatpush1.bf16.msra.mxu1 %v526_v16  ;;  %v198_v25 = vld [vmem:[%s825_s23 + $0x18] sm:$0xff]  ;;  %528 = vmatprep.subr.bf16.mxu0 %v718_v3  ;;  %v199_v30 = vld [vmem:[%s825_s23 + $0x20] sm:$0xff]  ;;  %v200_v35 = vld [vmem:[%s825_s23 + $0x28] sm:$0xff] }
  0x1f   : > { %556 = vmatprep.subr.bf16.mxu1 %v718_v3  ;;  %v217_v39 = vld [vmem:[%s825_s23 + $0xb0] sm:$0xff]  ;;  %v218_v44 = vld [vmem:[%s825_s23 + $0xb8] sm:$0xff]  ;;  %v219_v49 = vld [vmem:[%s825_s23 + $0xc0] sm:$0xf] }
  0x20   : > { %285 = vxpose.xlu0.b32.cont [2/9] (short) (narrow) %v212_v14, 16  ;;  %v201_v40 = vld [vmem:[%s825_s23 + $0x30] sm:$0xff]  ;;  %v202_v45 = vld [vmem:[%s825_s23 + $0x38] sm:$0xff]  ;;  %v203_v50 = vld [vmem:[%s825_s23 + $0x40] sm:$0xff] }
  0x21   : > { %253 = vxpose.xlu1.b32.cont [2/16] (narrow) %v196_v15, 16  ;;  %530 = vmatpush1.bf16.msra.mxu0 %v529_v21  ;;  %v204_v54 = vld [vmem:[%s825_s23 + $0x48] sm:$0xff]  ;;  %v205_v56 = vld [vmem:[%s825_s23 + $0x50] sm:$0xff]  ;;  %v206_v59 = vld [vmem:[%s825_s23 + $0x58] sm:$0xff] }
  0x22   : > { %569 = vmatpush1.bf16.msra.mxu1 %v529_v21  ;;  %531 = vmatprep.subr.bf16.mxu0 %v718_v3  ;;  %v207_v60 = vld [vmem:[%s825_s23 + $0x60] sm:$0xff]  ;;  %v208_v61 = vld [vmem:[%s825_s23 + $0x68] sm:$0xff]  ;;  %v209_v62 = vld [vmem:[%s825_s23 + $0x70] sm:$0xff] }
  0x23   : > { %557 = vmatprep.subr.bf16.mxu1 %v718_v3  ;;  %v210_v63 = vld [vmem:[%s825_s23 + $0x78] sm:$0xff]  ;;  %s185_s23 = scalar_lea.vmem [#allocation2], %s504_s6 }
  0x24   : > { %286 = vxpose.xlu0.b32.cont [3/9] (short) (narrow) %v213_v19, 16  ;;  %s420_s9 = sshll.u32 %s185_s23, 4  ;;  %s934_s9 = int_to_ptr.vmem [resolvable:$true] %s420_s9 }
  0x25   : > { %254 = vxpose.xlu1.b32.cont [3/16] (narrow) %v197_v20, 16  ;;  %533 = vmatpush1.bf16.msra.mxu0 %v532_v26  ;;  %s638_s26 = scalar_lea.vmem %s934_s9, 256  ;;  %p645_p1 = scmp.lt.s32.totalorder %s934_s9, %s643_s27 }
  0x26   : > { %570 = vmatpush1.bf16.msra.mxu1 %v532_v26  ;;  %534 = vmatprep.subr.bf16.mxu0 %v718_v3  ;;  %p639_p12 = scmp.ne.s32.totalorder %s934_s9, %s638_s26  ;;  %p646_p2 = scmp.lt.s32.totalorder %s644_s28, %s638_s26 }
  0x27   : > { %558 = vmatprep.subr.bf16.mxu1 %v718_v3 }
  0x28   : > { %287 = vxpose.xlu0.b32.cont [4/9] (short) (narrow) %v214_v24, 16  ;;  %p640_p13 = pnand %p639_p12, %p783_p4  ;;  %p647_p3 = por %p646_p2, %p645_p1 }
  0x29   : > { %255 = vxpose.xlu1.b32.cont [4/16] (narrow) %v198_v25, 16  ;;  %536 = vmatpush1.bf16.msra.mxu0 %v535_v31 }
  0x2a   : > { %571 = vmatpush1.bf16.msra.mxu1 %v535_v31  ;;  %537 = vmatprep.subr.bf16.mxu0 %v718_v3  ;;  %p641_p0 = pneg %p640_p13 }
  0x2b   : > { %559 = vmatprep.subr.bf16.mxu1 %v718_v3 }
  0x2c   : > { %288 = vxpose.xlu0.b32.cont [5/9] (short) (narrow) %v215_v29, 16  ;;  %p648_p5 = pnand %p647_p3, %p641_p0 }
  0x2d   : > { %256 = vxpose.xlu1.b32.cont [5/16] (narrow) %v199_v30, 16  ;;  %539 = vmatpush1.bf16.msra.mxu0 %v538_v36 }
  0x2e   : > { %572 = vmatpush1.bf16.msra.mxu1 %v538_v36  ;;  %540 = vmatprep.subr.bf16.mxu0 %v718_v3 }
  0x2f   : > { %560 = vmatprep.subr.bf16.mxu1 %v718_v3 }
  0x30   : > { %289 = vxpose.xlu0.b32.cont [6/9] (short) (narrow) %v216_v34, 16 }
  0x31   : > { %257 = vxpose.xlu1.b32.cont [6/16] (narrow) %v200_v35, 16  ;;  %542 = vmatpush1.bf16.msra.mxu0 %v541_v41 }
  0x32   : > { %573 = vmatpush1.bf16.msra.mxu1 %v541_v41  ;;  %543 = vmatprep.subr.bf16.mxu0 %v718_v3 }
  0x33   : > { %561 = vmatprep.subr.bf16.mxu1 %v718_v3 }
  0x34   : > { %290 = vxpose.xlu0.b32.cont [7/9] (short) (narrow) %v217_v39, 16 }
  0x35   : > { %258 = vxpose.xlu1.b32.cont [7/16] (narrow) %v201_v40, 16  ;;  %545 = vmatpush1.bf16.msra.mxu0 %v544_v46 }
  0x36   : > { %574 = vmatpush1.bf16.msra.mxu1 %v544_v46  ;;  %546 = vmatprep.subr.bf16.mxu0 %v718_v3 }
  0x37   : > { %562 = vmatprep.subr.bf16.mxu1 %v718_v3 }
  0x38   : > { %291 = vxpose.xlu0.b32.cont [8/9] (short) (narrow) %v218_v44, 16 }
  0x39   : > { %259 = vxpose.xlu1.b32.cont [8/16] (narrow) %v202_v45, 16  ;;  %548 = vmatpush1.bf16.msra.mxu0 %v547_v51 }
  0x3a   : > { %575 = vmatpush1.bf16.msra.mxu1 %v547_v51  ;;  %549 = vmatprep.subr.bf16.mxu0 %v718_v3 }
  0x3b   : > { %563 = vmatprep.subr.bf16.mxu1 %v718_v3 }
  0x3c   : > { %292 = vxpose.xlu0.b32.end [9/9] (short) (narrow) %v219_v49, 16 }
  0x3d   : > { %260 = vxpose.xlu1.b32.cont [9/16] (narrow) %v203_v50, 16  ;;  %551 = vmatpush1.bf16.msra.mxu0 %v550_v55 }
  0x3e   : > { %576 = vmatpush1.bf16.msra.mxu1 %v550_v55  ;;  %375 = vmatprep.subr.mxu0 %v719_v57 }
  0x3f   : > { %564 = vmatprep.subr.mxu1 %v719_v57 }
  0x41   : > { %261 = vxpose.xlu1.b32.cont [10/16] (narrow) %v204_v54, 16  ;;  %507 = vmatpush1.msk.msra.mxu0 %vm323_vm0, %v244_v58 }
  0x42   : > { %577 = vmatpush1.msk.msra.mxu1 %vm323_vm0, %v244_v58 }
  0x45   : > { %262 = vxpose.xlu1.b32.cont [11/16] (narrow) %v205_v56, 16 }
  0x49   : > { %263 = vxpose.xlu1.b32.cont [12/16] (narrow) %v206_v59, 16 }
  0x4d   : > { %264 = vxpose.xlu1.b32.cont [13/16] (narrow) %v207_v60, 16 }
  0x51   : > { %265 = vxpose.xlu1.b32.cont [14/16] (narrow) %v208_v61, 16 }
  0x55   : > { %266 = vxpose.xlu1.b32.cont [15/16] (narrow) %v209_v62, 16 }
  0x59   : > { %267 = vxpose.xlu1.b32.end [16/16] (narrow) %v210_v63, 16 }
  0x9c   : > { %v300_v0 = vpop.trf.xlu0 }
  0x9d   : > { %v268_v1 = vpop.trf.xlu1  ;;  %508 = vmatprep.mubr.msk.f32.mxu0 %vm316_vm1, %v300_v0 }
  0x9e   : > { %392 = vmatmul.mubr.f32.vlgmr.msra.gmra.mrb[0].mxu0 %v268_v1 }
  0xa0   : > { %v301_v2 = vpop.trf.xlu0 }
  0xa1   : > { %v269_v3 = vpop.trf.xlu1  ;;  %509 = vmatprep.mubr.msk.f32.mxu1 %vm316_vm1, %v301_v2 }
  0xa2   : > { %397 = vmatmul.mubr.f32.vlgmr.msra.gmra.mrb[0].mxu1 %v269_v3 }
 0x171   : > { %v393_v5 = vpop.f32.mrb[0].mxu0 }
 0x172   : > { %v394_v6 = vadd.f32 %v506_v4, %v393_v5  ;;  %v395_v7 = vpop.f32.mrb[1].mxu0 }
 0x174   : > { %402 = vst [vmem:[%s185_s23] sm:$0xff] %v394_v6 }
 0x175   : > { %v398_v8 = vpop.f32.mrb[0].mxu1 }
 0x176   : > { %v399_v9 = vadd.f32 %v506_v4, %v398_v8  ;;  %v400_v10 = vpop.f32.mrb[1].mxu1 }
 0x178   : > { %403 = vst [vmem:[%s185_s23 + $0x8] sm:$0xff] %v399_v9 }
 0x179   : > { %651 = shalt.err (!%p648_p5)
}
 0x17a   : > { %s652_s29 = scalar_lea.hbm %s939_s19, 256  ;;  %s656_s5 = scalar_lea.hbm %s990_s3, 512 }
 0x17b   : > { %p653_p6 = scmp.ne.s32.totalorder %s939_s19, %s652_s29  ;;  %p657_p10 = scmp.lt.u32.totalorder %s939_s19, %s990_s3 }
 0x17c   : > { %p658_p11 = scmp.lt.u32.totalorder %s656_s5, %s652_s29  ;;  %p660_p13 = scmp.lt.u32.totalorder %s652_s29, %s939_s19 }
 0x17d   : > { %p654_p7 = pnand %p653_p6, %p783_p4 }
 0x17e   : > { %p659_p12 = por %p658_p11, %p657_p10 }
 0x17f   : > { %p655_p9 = pneg %p654_p7 }
 0x180   : > { %p661_p0 = por %p660_p13, %p659_p12 }
 0x182   : > { %p662_p1 = pnand %p661_p0, %p655_p9 }
 0x184   : > { %665 = shalt.err (!%p662_p1)
}
 0x185   : > { %s721_s8 = smov 128   ;;  %s722_s23 = smov 8  }
 0x186   : > { %579 = dma.vmem_to_hbm [thread:$0]  (%p783_p4), %s934_s9, 256, %s939_s19, %s941_s21, %s721_s8, %s721_s8, %s722_s23  }
 0x187 PF: > { %p585_p2 = scmp.ge.s32.totalorder %s716_s17, 2  ;;  %s435_s10 = sand.u32 1, %s696_s12  }
 0x188   : > { %s436_s11 = scalar_lea.sflag [#allocation3], %s435_s10 }
 0x189   : > { %p582_p3 = pnand %p585_p2, %p790_p8 }
 0x18b   : > { %691 = dma.done.wait (!%p582_p3), %s436_s11, 256  }
 0x18c   : > { %693 = vsyncadd (!%p582_p3), %s436_s11, 4294967040  ;;  %s16_s17 = sadd.s32 1, %s716_s17   ;;  %s993_s12 = smov %s700_s13 }
 0x18d   : > { %p13_p5 = scmp.ge.s32.totalorder %s16_s17, 4   ;;  %s994_s13 = smov %s704_s14 }
 0x18e   : > { %s995_s14 = smov %s796_s25  ;;  %s996_s15 = smov %s712_s16 }
 0x18f   : > { %s997_s16 = smov %s999_s20  ;;  %15 = sbr.rel (!%p13_p5) target bundleno = 4 (0x4), region = 67 }
 0x196   :  { %441 = vsyncpa [#allocation3], 1 }
 0x197   :  { %443 = vsyncpa [#allocation3 + $0x1], 1 }

</bundles_post_ra>
